<compile_context>
chip_gen: v5e
topology: v5e:2x2
jax: 0.10.0
libtpu: 0.0.40
codegen_flags: <defaults>
</compile_context>

<pallas_src>
import functools
import math

import jax
import jax.numpy as jnp
from jax.experimental import pallas as pl
from jax.experimental.pallas import tpu as pltpu

_MIB = 1024 * 1024


# ---------------------------------------------------------------------------
# VMEM / tiling helpers (respect the (8, 128) block constraints)
# ---------------------------------------------------------------------------
@functools.lru_cache(maxsize=None)
def _vmem_limit_bytes():
    """Scoped-VMEM limit that is safe on every generation."""
    try:
        cap = pltpu.get_tpu_info().vmem_capacity_bytes   # 64 MiB v7x, 128 MiB v5e/v6e
    except Exception:
        cap = 64 * _MIB                                   # conservative fallback
    return int(min(cap * 3 // 4, 96 * _MIB))


def _largest_divisor_tile(n, cap, gran):
    """Largest t <= cap with n % t == 0 and t % gran == 0.
    Falls back to the full axis (always correct) when n is ragged."""
    cap = max(cap, gran)
    if n <= cap:
        return n
    t = (min(cap, n) // gran) * gran
    while t >= gran:
        if n % t == 0:
            return t
        t -= gran
    return n


def _split_for_both_cores(n, tile, gran, other_steps):
    """v7x megacore: make sure the 'parallel' grid has >= 2 total steps."""
    while other_steps * (n // tile) < 2 and tile % (2 * gran) == 0:
        tile //= 2
    return tile


# ---------------------------------------------------------------------------
# Kernel 1: sequence squeeze of K and V (lane-dense matmuls, scale folded in)
# ---------------------------------------------------------------------------
def _make_squeeze_kernel(scale):
    def kernel(k_ref, v_ref, w_ref, b_ref, ks_ref, vs_ref):
        # MXU operands in bf16 (no-op cast if inputs already bf16);
        # accumulation / bias / scaling stay in f32.
        w = w_ref[...]                                    # (M, S)   bf16
        b = b_ref[...]                                    # (M, 1)   f32
        k = k_ref[0].astype(jnp.bfloat16)                 # (S, thd)
        v = v_ref[0].astype(jnp.bfloat16)
        ks = jnp.dot(w, k, preferred_element_type=jnp.float32) + b
        vs = jnp.dot(w, v, preferred_element_type=jnp.float32) + b
        # Fold the softmax 1/sqrt(D) scale into the keys path (M*HD mults per
        # batch instead of per query row): softmax(s*q.ks) == softmax(q.(s*ks)).
        ks_ref[0] = (ks * scale).astype(ks_ref.dtype)
        vs_ref[0] = vs.astype(vs_ref.dtype)
    return kernel


def pallas_squeeze(k2, v2, w, b, scale, *, vmem_limit):
    """k2, v2: (B, S, H*D); w: (M, S) bf16; b: (M,) f32.
    Returns (scale * squeeze(K), squeeze(V)), each (B, M, H*D) bf16."""
    B, S, HD = k2.shape
    M = w.shape[0]
    in_b = k2.dtype.itemsize
    out_b = 2                                             # bf16 intermediates

    # Lane-tile H*D from a VMEM budget: 2 inputs + 2 outputs, double-buffered.
    # TODO(synk): for very long S (>~16k) also tile S with an "arbitrary" grid
    # axis + VMEM accumulator; not needed at typical sequence lengths.
    budget = vmem_limit // 2
    fixed = 2 * (M * S * w.dtype.itemsize + M * 4)
    per_t = 2 * (2 * S * in_b + 2 * M * out_b)
    cap = max(128, min((budget - fixed) // per_t, 2048))
    thd = _largest_divisor_tile(HD, cap, 128)
    thd = _split_for_both_cores(HD, thd, 128, B)
    grid = (B, HD // thd)

    io_spec = pl.BlockSpec((1, S, thd), lambda i, j: (i, 0, j))
    out_spec = pl.BlockSpec((1, M, thd), lambda i, j: (i, 0, j))
    flops = 2 * 2 * B * M * S * HD
    bytes_accessed = (in_b * 2 * B * S * HD + out_b * 2 * B * M * HD
                      + 2 * M * S + 4 * M)

    return pl.pallas_call(
        _make_squeeze_kernel(scale),
        grid=grid,
        in_specs=[io_spec, io_spec,
                  pl.BlockSpec((M, S), lambda i, j: (0, 0)),
                  pl.BlockSpec((M, 1), lambda i, j: (0, 0))],
        out_specs=(out_spec, out_spec),
        out_shape=(jax.ShapeDtypeStruct((B, M, HD), jnp.bfloat16),
                   jax.ShapeDtypeStruct((B, M, HD), jnp.bfloat16)),
        compiler_params=pltpu.CompilerParams(
            dimension_semantics=("parallel", "parallel"),
            vmem_limit_bytes=vmem_limit),
        cost_estimate=pl.CostEstimate(flops=flops, transcendentals=0,
                                      bytes_accessed=bytes_accessed),
    )(k2, v2, w, b.reshape(M, 1))


# ---------------------------------------------------------------------------
# Kernel 2: fused attention, native-layout q, lane-dense ctx output
# ---------------------------------------------------------------------------
def _make_attn_kernel(H, D, output_attention):
    def kernel(q_ref, ks_ref, vs_ref, o_ref, *attn_ref):
        q = q_ref[0].astype(jnp.bfloat16)                 # (tl, H*D)
        ks = ks_ref[0]                                    # (M, H*D)  bf16
        vs = vs_ref[0]                                    # (M, H*D)  bf16
        ctx_parts = []
        for h in range(H):                                # static unroll
            sl = slice(h * D, (h + 1) * D)
            # scores: the 1/sqrt(D) scale is already folded into ks.
            s = jnp.einsum("ld,md->lm", q[:, sl], ks[:, sl],
                           preferred_element_type=jnp.float32)    # (tl, M) f32
            m = jnp.max(s, axis=-1, keepdims=True)
            p = jnp.exp(s - m)                            # softmax math in f32
            a = p * pl.reciprocal(jnp.sum(p, axis=-1, keepdims=True),
                                  approx=True)
            if output_attention:
                attn_ref[0][0, h] = a
            ctx_parts.append(jnp.dot(a.astype(jnp.bfloat16), vs[:, sl],
                                     preferred_element_type=jnp.float32))
        # Single lane-dense (tl, H*D) store instead of H masked (tl, D) stores.
        o_ref[0] = jnp.concatenate(ctx_parts, axis=-1).astype(o_ref.dtype)
    return kernel


def pallas_attention(q2, ks2, vs2, H, D, output_attention, *, vmem_limit):
    """q2: (B, L, H*D); ks2/vs2: (B, M, H*D) bf16 (keys pre-scaled).
    Returns ctx (B, L, H*D) and optionally attn (B, H, L, M) f32."""
    B, L, HD = q2.shape
    M = ks2.shape[1]
    io_b = q2.dtype.itemsize
    Mp = max(M, 128)                        # lane padding of (.., M) f32 tiles
    HDp = max(HD, 128)

    budget = vmem_limit // 2
    fixed = 2 * 2 * M * HDp * 2             # ks + vs blocks, double-buffered
    per_t = 2 * 2 * HDp * io_b + HDp * 4 + 4 * Mp * 4   # q/o blocks + f32 temps
    if output_attention:
        per_t += 2 * H * Mp * 4
    cap = max(8, min((budget - fixed) // per_t, 256))    # cap L-tile (v7x VMEM)
    tl = _largest_divisor_tile(L, cap, 8)
    tl = _split_for_both_cores(L, tl, 8, B)
    grid = (B, L // tl)

    in_specs = [pl.BlockSpec((1, tl, HD), lambda b, lt: (b, lt, 0)),
                pl.BlockSpec((1, M, HD), lambda b, lt: (b, 0, 0)),
                pl.BlockSpec((1, M, HD), lambda b, lt: (b, 0, 0))]
    out_shape = [jax.ShapeDtypeStruct((B, L, HD), q2.dtype)]
    out_specs = [pl.BlockSpec((1, tl, HD), lambda b, lt: (b, lt, 0))]
    if output_attention:
        # Debug-only output: last dim M < 128 -> masked stores; accepted.
        out_shape.append(jax.ShapeDtypeStruct((B, H, L, M), jnp.float32))
        out_specs.append(pl.BlockSpec((1, H, tl, M), lambda b, lt: (b, 0, lt, 0)))

    flops = 2 * 2 * B * L * HD * M
    bytes_accessed = (2 * io_b * B * L * HD + 2 * 2 * B * M * HD
                      + (4 * B * H * L * M if output_attention else 0))

    res = pl.pallas_call(
        _make_attn_kernel(H, D, output_attention),
        grid=grid,
        in_specs=in_specs,
        out_specs=tuple(out_specs),
        out_shape=tuple(out_shape),
        compiler_params=pltpu.CompilerParams(
            dimension_semantics=("parallel", "parallel"),
            vmem_limit_bytes=vmem_limit),
        cost_estimate=pl.CostEstimate(flops=flops,
                                      transcendentals=B * H * L * M,
                                      bytes_accessed=bytes_accessed),
    )(q2, ks2, vs2)
    if output_attention:
        return res[0], res[1]
    return res[0], None


# ---------------------------------------------------------------------------
# Forward pass (eval mode)
# ---------------------------------------------------------------------------
def my_attention_forward(params, queries, keys, values, scale=None,
                         output_attention=False):
    """queries: (B, L, H, D); keys/values: (B, S, H, D) with S == L_k.
    attn_mask of the reference module is unused; eval-mode dropout == identity."""
    B, L, H, D = queries.shape
    S = keys.shape[1]
    scale = (1.0 / math.sqrt(D)) if scale is None else scale
    vmem_limit = _vmem_limit_bytes()

    # All reshapes below only merge/split contiguous trailing dims -> free
    # views (no HBM pass), unlike the transposes they replace.
    ks2, vs2 = pallas_squeeze(
        keys.reshape(B, S, H * D), values.reshape(B, S, H * D),
        params["w_sq"].astype(jnp.bfloat16),
        params["b_sq"].astype(jnp.float32), scale,
        vmem_limit=vmem_limit)                            # (B, M, H*D) bf16

    ctx2, attn = pallas_attention(queries.reshape(B, L, H * D), ks2, vs2,
                                  H, D, output_attention,
                                  vmem_limit=vmem_limit)  # (B, L, H*D)
    ctx = ctx2.reshape(B, L, H, D)

    # TODO(synk): train-mode nn.Dropout(p=0.1) on the attention probabilities
    # is omitted (eval-mode forward only).
    if output_attention:
        return ctx, attn
    return ctx, None


# ---------------------------------------------------------------------------
# Pure-JAX reference (no Pallas) for correctness checking
# ---------------------------------------------------------------------------
def reference_forward(queries, keys, values, w, b, scale=None):
    B, L, H, D = queries.shape
    scale = (1.0 / math.sqrt(D)) if scale is None else scale
    ks = jnp.einsum("bshd,ms->bmhd", keys, w) + b[None, :, None, None]
    vs = jnp.einsum("bshd,ms->bmhd", values, w) + b[None, :, None, None]
    attn = jnp.einsum("blhd,bmhd->bhlm", queries, ks) * scale
    attn = jax.nn.softmax(attn, axis=-1)
    ctx = jnp.einsum("bhlm,bmhd->blhd", attn, vs)
    return ctx, attn


# ---------------------------------------------------------------------------
if __name__ == "__main__":
    # B, L (query len), S = L_k (key/value len), H heads, D per-head dim, M squeeze dim
    B, L, S, H, D, M = 2, 16, 16, 4, 8, 8

    key = jax.random.PRNGKey(0)
    kq, kk, kv, kw, kb = jax.random.split(key, 5)
    queries = jax.random.normal(kq, (B, L, H, D), dtype=jnp.float32)
    keys_in = jax.random.normal(kk, (B, S, H, D), dtype=jnp.float32)
    values_in = jax.random.normal(kv, (B, S, H, D), dtype=jnp.float32)
    params = {
        # torch nn.Linear(L_k, M): weight (M, L_k), bias (M,)
        "w_sq": (0.1 * jax.random.normal(kw, (M, S))).astype(jnp.float32),
        "b_sq": (0.1 * jax.random.normal(kb, (M,))).astype(jnp.float32),
    }

    fwd = jax.jit(my_attention_forward,
                  static_argnames=("scale", "output_attention"))

    out, attn = fwd(params, queries, keys_in, values_in, output_attention=True)
    out = jax.block_until_ready(out)
    attn = jax.block_until_ready(attn)

    ref_out, ref_attn = reference_forward(queries, keys_in, values_in,
                                          params["w_sq"], params["b_sq"])
    assert out.shape == (B, L, H, D)
    assert attn.shape == (B, H, L, M)
    # bf16 MXU operands + EUP approx reciprocal -> ~1e-2 absolute agreement
    # against the pure-f32 reference.
    assert jnp.max(jnp.abs(out - ref_out)) < 1e-2
    assert jnp.max(jnp.abs(attn - ref_attn)) < 1e-2

    # default path (output_attention=False) skips the probability writeback
    out2, attn2 = fwd(params, queries, keys_in, values_in,
                      output_attention=False)
    out2 = jax.block_until_ready(out2)
    assert attn2 is None
    assert jnp.max(jnp.abs(out2 - ref_out)) < 1e-2

    print("KERNEL_OK")
</pallas_src>

<mosaic_0001>
module attributes {stable_mosaic.version = 11 : i64} {
  func.func @kernel(%arg0: i32, %arg1: i32, %arg2: memref<1x16x32xf32, #tpu.memory_space<vmem>>, %arg3: memref<1x16x32xf32, #tpu.memory_space<vmem>>, %arg4: memref<8x16xbf16, #tpu.memory_space<vmem>>, %arg5: memref<8x1xf32, #tpu.memory_space<vmem>>, %arg6: memref<1x8x32xbf16, #tpu.memory_space<vmem>>, %arg7: memref<1x8x32xbf16, #tpu.memory_space<vmem>>) attributes {dimension_semantics = [#tpu.dimension_semantics<parallel>, #tpu.dimension_semantics<parallel>], iteration_bounds = array<i64: 2, 1>, scalar_prefetch = 0 : i64, scratch_operands = 0 : i64, tpu.core_type = #tpu.core_type<tc>, window_params = [{transform_indices = @transform_0, window_bounds = array<i64: 1, 16, 32>}, {transform_indices = @transform_1, window_bounds = array<i64: 1, 16, 32>}, {pipeline_mode = #tpu.pipeline_mode<synchronous>, transform_indices = @transform_2, window_bounds = array<i64: 8, 16>}, {pipeline_mode = #tpu.pipeline_mode<synchronous>, transform_indices = @transform_3, window_bounds = array<i64: 8, 1>}, {transform_indices = @transform_4, window_bounds = array<i64: 1, 8, 32>}, {transform_indices = @transform_5, window_bounds = array<i64: 1, 8, 32>}]} {
    %c0 = arith.constant 0 : index
    %c0_0 = arith.constant 0 : index
    %0 = vector.load %arg4[%c0, %c0_0] : memref<8x16xbf16, #tpu.memory_space<vmem>>, vector<8x16xbf16>
    %c0_1 = arith.constant 0 : index
    %c0_2 = arith.constant 0 : index
    %1 = vector.load %arg5[%c0_1, %c0_2] : memref<8x1xf32, #tpu.memory_space<vmem>>, vector<8x1xf32>
    %c0_3 = arith.constant 0 : index
    %c0_4 = arith.constant 0 : index
    %c0_5 = arith.constant 0 : index
    %2 = vector.load %arg2[%c0_3, %c0_4, %c0_5] : memref<1x16x32xf32, #tpu.memory_space<vmem>>, vector<1x16x32xf32>
    %3 = vector.shape_cast %2 : vector<1x16x32xf32> to vector<16x32xf32>
    %4 = arith.truncf %3 : vector<16x32xf32> to vector<16x32xbf16>
    %c0_6 = arith.constant 0 : index
    %c0_7 = arith.constant 0 : index
    %c0_8 = arith.constant 0 : index
    %5 = vector.load %arg3[%c0_6, %c0_7, %c0_8] : memref<1x16x32xf32, #tpu.memory_space<vmem>>, vector<1x16x32xf32>
    %6 = vector.shape_cast %5 : vector<1x16x32xf32> to vector<16x32xf32>
    %7 = arith.truncf %6 : vector<16x32xf32> to vector<16x32xbf16>
    %cst = arith.constant dense<0.000000e+00> : vector<8x32xf32>
    %8 = tpu.matmul %0, %4, %cst {dimension_numbers = #tpu.dot_dimension_numbers<[1], [0], [0], [1], [0, 0, 1, 1], [], []>} : vector<8x16xbf16>, vector<16x32xbf16>, vector<8x32xf32> -> vector<8x32xf32>
    %9 = vector.broadcast %1 : vector<8x1xf32> to vector<8x32xf32>
    %10 = arith.addf %8, %9 : vector<8x32xf32>
    %cst_9 = arith.constant dense<0.000000e+00> : vector<8x32xf32>
    %11 = tpu.matmul %0, %7, %cst_9 {dimension_numbers = #tpu.dot_dimension_numbers<[1], [0], [0], [1], [0, 0, 1, 1], [], []>} : vector<8x16xbf16>, vector<16x32xbf16>, vector<8x32xf32> -> vector<8x32xf32>
    %12 = vector.broadcast %1 : vector<8x1xf32> to vector<8x32xf32>
    %13 = arith.addf %11, %12 : vector<8x32xf32>
    %cst_10 = arith.constant 0.353553385 : f32
    %14 = vector.broadcast %cst_10 : f32 to vector<8x32xf32>
    %15 = arith.mulf %10, %14 : vector<8x32xf32>
    %16 = arith.truncf %15 : vector<8x32xf32> to vector<8x32xbf16>
    %c0_11 = arith.constant 0 : index
    %c0_12 = arith.constant 0 : index
    %c0_13 = arith.constant 0 : index
    %17 = vector.load %arg6[%c0_11, %c0_12, %c0_13] : memref<1x8x32xbf16, #tpu.memory_space<vmem>>, vector<1x8x32xbf16>
    %18 = vector.shape_cast %17 : vector<1x8x32xbf16> to vector<8x32xbf16>
    %19 = vector.shape_cast %16 : vector<8x32xbf16> to vector<1x8x32xbf16>
    tpu.vector_store %arg6[%c0_11, %c0_12, %c0_13], %19 {strides = array<i32>} : memref<1x8x32xbf16, #tpu.memory_space<vmem>>, vector<1x8x32xbf16>,
    %20 = arith.truncf %13 : vector<8x32xf32> to vector<8x32xbf16>
    %c0_14 = arith.constant 0 : index
    %c0_15 = arith.constant 0 : index
    %c0_16 = arith.constant 0 : index
    %21 = vector.load %arg7[%c0_14, %c0_15, %c0_16] : memref<1x8x32xbf16, #tpu.memory_space<vmem>>, vector<1x8x32xbf16>
    %22 = vector.shape_cast %21 : vector<1x8x32xbf16> to vector<8x32xbf16>
    %23 = vector.shape_cast %20 : vector<8x32xbf16> to vector<1x8x32xbf16>
    tpu.vector_store %arg7[%c0_14, %c0_15, %c0_16], %23 {strides = array<i32>} : memref<1x8x32xbf16, #tpu.memory_space<vmem>>, vector<1x8x32xbf16>,
    return
  }
  func.func @transform_0(%arg0: i32, %arg1: i32) -> (i32, i32, i32) {
    %c0_i32 = arith.constant 0 : i32
    %c0_i32_0 = arith.constant 0 : i32
    return %arg0, %c0_i32, %arg1 : i32, i32, i32
  }
  func.func @transform_1(%arg0: i32, %arg1: i32) -> (i32, i32, i32) {
    %c0_i32 = arith.constant 0 : i32
    %c0_i32_0 = arith.constant 0 : i32
    return %arg0, %c0_i32, %arg1 : i32, i32, i32
  }
  func.func @transform_2(%arg0: i32, %arg1: i32) -> (i32, i32) {
    %c0_i32 = arith.constant 0 : i32
    %c0_i32_0 = arith.constant 0 : i32
    %c0_i32_1 = arith.constant 0 : i32
    return %c0_i32, %c0_i32_0 : i32, i32
  }
  func.func @transform_3(%arg0: i32, %arg1: i32) -> (i32, i32) {
    %c0_i32 = arith.constant 0 : i32
    %c0_i32_0 = arith.constant 0 : i32
    %c0_i32_1 = arith.constant 0 : i32
    return %c0_i32, %c0_i32_0 : i32, i32
  }
  func.func @transform_4(%arg0: i32, %arg1: i32) -> (i32, i32, i32) {
    %c0_i32 = arith.constant 0 : i32
    %c0_i32_0 = arith.constant 0 : i32
    return %arg0, %c0_i32, %arg1 : i32, i32, i32
  }
  func.func @transform_5(%arg0: i32, %arg1: i32) -> (i32, i32, i32) {
    %c0_i32 = arith.constant 0 : i32
    %c0_i32_0 = arith.constant 0 : i32
    return %arg0, %c0_i32, %arg1 : i32, i32, i32
  }
}

module attributes {stable_mosaic.version = 11 : i64} {
  func.func @kernel(%arg0: i32, %arg1: i32, %arg2: memref<1x16x32xf32, #tpu.memory_space<vmem>>, %arg3: memref<1x8x32xbf16, #tpu.memory_space<vmem>>, %arg4: memref<1x8x32xbf16, #tpu.memory_space<vmem>>, %arg5: memref<1x16x32xf32, #tpu.memory_space<vmem>>, %arg6: memref<1x4x16x8xf32, #tpu.memory_space<vmem>>) attributes {dimension_semantics = [#tpu.dimension_semantics<parallel>, #tpu.dimension_semantics<parallel>], iteration_bounds = array<i64: 2, 1>, scalar_prefetch = 0 : i64, scratch_operands = 0 : i64, tpu.core_type = #tpu.core_type<tc>, window_params = [{transform_indices = @transform_0, window_bounds = array<i64: 1, 16, 32>}, {transform_indices = @transform_1, window_bounds = array<i64: 1, 8, 32>}, {transform_indices = @transform_2, window_bounds = array<i64: 1, 8, 32>}, {transform_indices = @transform_3, window_bounds = array<i64: 1, 16, 32>}, {transform_indices = @transform_4, window_bounds = array<i64: 1, 4, 16, 8>}]} {
    %c0 = arith.constant 0 : index
    %c0_0 = arith.constant 0 : index
    %c0_1 = arith.constant 0 : index
    %0 = vector.load %arg2[%c0, %c0_0, %c0_1] : memref<1x16x32xf32, #tpu.memory_space<vmem>>, vector<1x16x32xf32>
    %1 = vector.shape_cast %0 : vector<1x16x32xf32> to vector<16x32xf32>
    %2 = arith.truncf %1 : vector<16x32xf32> to vector<16x32xbf16>
    %c0_2 = arith.constant 0 : index
    %c0_3 = arith.constant 0 : index
    %c0_4 = arith.constant 0 : index
    %3 = vector.load %arg3[%c0_2, %c0_3, %c0_4] : memref<1x8x32xbf16, #tpu.memory_space<vmem>>, vector<1x8x32xbf16>
    %4 = vector.shape_cast %3 : vector<1x8x32xbf16> to vector<8x32xbf16>
    %c0_5 = arith.constant 0 : index
    %c0_6 = arith.constant 0 : index
    %c0_7 = arith.constant 0 : index
    %5 = vector.load %arg4[%c0_5, %c0_6, %c0_7] : memref<1x8x32xbf16, #tpu.memory_space<vmem>>, vector<1x8x32xbf16>
    %6 = vector.shape_cast %5 : vector<1x8x32xbf16> to vector<8x32xbf16>
    %7 = vector.extract_strided_slice %2 {offsets = [0, 0], sizes = [16, 8], strides = [1, 1]} : vector<16x32xbf16> to vector<16x8xbf16>
    %8 = vector.extract_strided_slice %4 {offsets = [0, 0], sizes = [8, 8], strides = [1, 1]} : vector<8x32xbf16> to vector<8x8xbf16>
    "tpu.trace_start"() <{level = 10 : i32, message = "ld,md->lm"}> : () -> ()
    %cst = arith.constant dense<0.000000e+00> : vector<16x8xf32>
    %9 = tpu.matmul %7, %8, %cst {dimension_numbers = #tpu.dot_dimension_numbers<[1], [1], [0], [0], [0, 0, 1, 0], [], []>} : vector<16x8xbf16>, vector<8x8xbf16>, vector<16x8xf32> -> vector<16x8xf32>
    "tpu.trace_stop"() : () -> ()
    %cst_8 = arith.constant dense<0xFF800000> : vector<16xf32>
    %10 = vector.multi_reduction <maximumf>, %9, %cst_8 [1] : vector<16x8xf32> to vector<16xf32>
    %11 = vector.shape_cast %10 : vector<16xf32> to vector<16x1xf32>
    %12 = vector.broadcast %11 : vector<16x1xf32> to vector<16x8xf32>
    %13 = arith.subf %9, %12 : vector<16x8xf32>
    %14 = math.exp %13 : vector<16x8xf32>
    %cst_9 = arith.constant dense<0.000000e+00> : vector<16xf32>
    %15 = vector.multi_reduction <add>, %14, %cst_9 [1] : vector<16x8xf32> to vector<16xf32>
    %16 = vector.shape_cast %15 : vector<16xf32> to vector<16x1xf32>
    %17 = tpu.reciprocal %16 {approx = true} : vector<16x1xf32> -> vector<16x1xf32>
    %18 = vector.broadcast %17 : vector<16x1xf32> to vector<16x8xf32>
    %19 = arith.mulf %14, %18 : vector<16x8xf32>
    %c0_10 = arith.constant 0 : index
    %c0_11 = arith.constant 0 : index
    %c0_12 = arith.constant 0 : index
    %c0_13 = arith.constant 0 : index
    %20 = vector.load %arg6[%c0_10, %c0_11, %c0_12, %c0_13] : memref<1x4x16x8xf32, #tpu.memory_space<vmem>>, vector<1x1x16x8xf32>
    %21 = vector.shape_cast %20 : vector<1x1x16x8xf32> to vector<16x8xf32>
    %22 = vector.shape_cast %19 : vector<16x8xf32> to vector<1x1x16x8xf32>
    tpu.vector_store %arg6[%c0_10, %c0_11, %c0_12, %c0_13], %22 {strides = array<i32>} : memref<1x4x16x8xf32, #tpu.memory_space<vmem>>, vector<1x1x16x8xf32>,
    %23 = arith.truncf %19 : vector<16x8xf32> to vector<16x8xbf16>
    %24 = vector.extract_strided_slice %6 {offsets = [0, 0], sizes = [8, 8], strides = [1, 1]} : vector<8x32xbf16> to vector<8x8xbf16>
    %cst_14 = arith.constant dense<0.000000e+00> : vector<16x8xf32>
    %25 = tpu.matmul %23, %24, %cst_14 {dimension_numbers = #tpu.dot_dimension_numbers<[1], [0], [0], [1], [0, 0, 1, 1], [], []>} : vector<16x8xbf16>, vector<8x8xbf16>, vector<16x8xf32> -> vector<16x8xf32>
    %26 = vector.extract_strided_slice %2 {offsets = [0, 8], sizes = [16, 8], strides = [1, 1]} : vector<16x32xbf16> to vector<16x8xbf16>
    %27 = vector.extract_strided_slice %4 {offsets = [0, 8], sizes = [8, 8], strides = [1, 1]} : vector<8x32xbf16> to vector<8x8xbf16>
    "tpu.trace_start"() <{level = 10 : i32, message = "ld,md->lm"}> : () -> ()
    %cst_15 = arith.constant dense<0.000000e+00> : vector<16x8xf32>
    %28 = tpu.matmul %26, %27, %cst_15 {dimension_numbers = #tpu.dot_dimension_numbers<[1], [1], [0], [0], [0, 0, 1, 0], [], []>} : vector<16x8xbf16>, vector<8x8xbf16>, vector<16x8xf32> -> vector<16x8xf32>
    "tpu.trace_stop"() : () -> ()
    %cst_16 = arith.constant dense<0xFF800000> : vector<16xf32>
    %29 = vector.multi_reduction <maximumf>, %28, %cst_16 [1] : vector<16x8xf32> to vector<16xf32>
    %30 = vector.shape_cast %29 : vector<16xf32> to vector<16x1xf32>
    %31 = vector.broadcast %30 : vector<16x1xf32> to vector<16x8xf32>
    %32 = arith.subf %28, %31 : vector<16x8xf32>
    %33 = math.exp %32 : vector<16x8xf32>
    %cst_17 = arith.constant dense<0.000000e+00> : vector<16xf32>
    %34 = vector.multi_reduction <add>, %33, %cst_17 [1] : vector<16x8xf32> to vector<16xf32>
    %35 = vector.shape_cast %34 : vector<16xf32> to vector<16x1xf32>
    %36 = tpu.reciprocal %35 {approx = true} : vector<16x1xf32> -> vector<16x1xf32>
    %37 = vector.broadcast %36 : vector<16x1xf32> to vector<16x8xf32>
    %38 = arith.mulf %33, %37 : vector<16x8xf32>
    %c0_18 = arith.constant 0 : index
    %c1 = arith.constant 1 : index
    %c0_19 = arith.constant 0 : index
    %c0_20 = arith.constant 0 : index
    %39 = vector.load %arg6[%c0_18, %c1, %c0_19, %c0_20] : memref<1x4x16x8xf32, #tpu.memory_space<vmem>>, vector<1x1x16x8xf32>
    %40 = vector.shape_cast %39 : vector<1x1x16x8xf32> to vector<16x8xf32>
    %41 = vector.shape_cast %38 : vector<16x8xf32> to vector<1x1x16x8xf32>
    tpu.vector_store %arg6[%c0_18, %c1, %c0_19, %c0_20], %41 {strides = array<i32>} : memref<1x4x16x8xf32, #tpu.memory_space<vmem>>, vector<1x1x16x8xf32>,
    %42 = arith.truncf %38 : vector<16x8xf32> to vector<16x8xbf16>
    %43 = vector.extract_strided_slice %6 {offsets = [0, 8], sizes = [8, 8], strides = [1, 1]} : vector<8x32xbf16> to vector<8x8xbf16>
    %cst_21 = arith.constant dense<0.000000e+00> : vector<16x8xf32>
    %44 = tpu.matmul %42, %43, %cst_21 {dimension_numbers = #tpu.dot_dimension_numbers<[1], [0], [0], [1], [0, 0, 1, 1], [], []>} : vector<16x8xbf16>, vector<8x8xbf16>, vector<16x8xf32> -> vector<16x8xf32>
    %45 = vector.extract_strided_slice %2 {offsets = [0, 16], sizes = [16, 8], strides = [1, 1]} : vector<16x32xbf16> to vector<16x8xbf16>
    %46 = vector.extract_strided_slice %4 {offsets = [0, 16], sizes = [8, 8], strides = [1, 1]} : vector<8x32xbf16> to vector<8x8xbf16>
    "tpu.trace_start"() <{level = 10 : i32, message = "ld,md->lm"}> : () -> ()
    %cst_22 = arith.constant dense<0.000000e+00> : vector<16x8xf32>
    %47 = tpu.matmul %45, %46, %cst_22 {dimension_numbers = #tpu.dot_dimension_numbers<[1], [1], [0], [0], [0, 0, 1, 0], [], []>} : vector<16x8xbf16>, vector<8x8xbf16>, vector<16x8xf32> -> vector<16x8xf32>
    "tpu.trace_stop"() : () -> ()
    %cst_23 = arith.constant dense<0xFF800000> : vector<16xf32>
    %48 = vector.multi_reduction <maximumf>, %47, %cst_23 [1] : vector<16x8xf32> to vector<16xf32>
    %49 = vector.shape_cast %48 : vector<16xf32> to vector<16x1xf32>
    %50 = vector.broadcast %49 : vector<16x1xf32> to vector<16x8xf32>
    %51 = arith.subf %47, %50 : vector<16x8xf32>
    %52 = math.exp %51 : vector<16x8xf32>
    %cst_24 = arith.constant dense<0.000000e+00> : vector<16xf32>
    %53 = vector.multi_reduction <add>, %52, %cst_24 [1] : vector<16x8xf32> to vector<16xf32>
    %54 = vector.shape_cast %53 : vector<16xf32> to vector<16x1xf32>
    %55 = tpu.reciprocal %54 {approx = true} : vector<16x1xf32> -> vector<16x1xf32>
    %56 = vector.broadcast %55 : vector<16x1xf32> to vector<16x8xf32>
    %57 = arith.mulf %52, %56 : vector<16x8xf32>
    %c0_25 = arith.constant 0 : index
    %c2 = arith.constant 2 : index
    %c0_26 = arith.constant 0 : index
    %c0_27 = arith.constant 0 : index
    %58 = vector.load %arg6[%c0_25, %c2, %c0_26, %c0_27] : memref<1x4x16x8xf32, #tpu.memory_space<vmem>>, vector<1x1x16x8xf32>
    %59 = vector.shape_cast %58 : vector<1x1x16x8xf32> to vector<16x8xf32>
    %60 = vector.shape_cast %57 : vector<16x8xf32> to vector<1x1x16x8xf32>
    tpu.vector_store %arg6[%c0_25, %c2, %c0_26, %c0_27], %60 {strides = array<i32>} : memref<1x4x16x8xf32, #tpu.memory_space<vmem>>, vector<1x1x16x8xf32>,
    %61 = arith.truncf %57 : vector<16x8xf32> to vector<16x8xbf16>
    %62 = vector.extract_strided_slice %6 {offsets = [0, 16], sizes = [8, 8], strides = [1, 1]} : vector<8x32xbf16> to vector<8x8xbf16>
    %cst_28 = arith.constant dense<0.000000e+00> : vector<16x8xf32>
    %63 = tpu.matmul %61, %62, %cst_28 {dimension_numbers = #tpu.dot_dimension_numbers<[1], [0], [0], [1], [0, 0, 1, 1], [], []>} : vector<16x8xbf16>, vector<8x8xbf16>, vector<16x8xf32> -> vector<16x8xf32>
    %64 = vector.extract_strided_slice %2 {offsets = [0, 24], sizes = [16, 8], strides = [1, 1]} : vector<16x32xbf16> to vector<16x8xbf16>
    %65 = vector.extract_strided_slice %4 {offsets = [0, 24], sizes = [8, 8], strides = [1, 1]} : vector<8x32xbf16> to vector<8x8xbf16>
    "tpu.trace_start"() <{level = 10 : i32, message = "ld,md->lm"}> : () -> ()
    %cst_29 = arith.constant dense<0.000000e+00> : vector<16x8xf32>
    %66 = tpu.matmul %64, %65, %cst_29 {dimension_numbers = #tpu.dot_dimension_numbers<[1], [1], [0], [0], [0, 0, 1, 0], [], []>} : vector<16x8xbf16>, vector<8x8xbf16>, vector<16x8xf32> -> vector<16x8xf32>
    "tpu.trace_stop"() : () -> ()
    %cst_30 = arith.constant dense<0xFF800000> : vector<16xf32>
    %67 = vector.multi_reduction <maximumf>, %66, %cst_30 [1] : vector<16x8xf32> to vector<16xf32>
    %68 = vector.shape_cast %67 : vector<16xf32> to vector<16x1xf32>
    %69 = vector.broadcast %68 : vector<16x1xf32> to vector<16x8xf32>
    %70 = arith.subf %66, %69 : vector<16x8xf32>
    %71 = math.exp %70 : vector<16x8xf32>
    %cst_31 = arith.constant dense<0.000000e+00> : vector<16xf32>
    %72 = vector.multi_reduction <add>, %71, %cst_31 [1] : vector<16x8xf32> to vector<16xf32>
    %73 = vector.shape_cast %72 : vector<16xf32> to vector<16x1xf32>
    %74 = tpu.reciprocal %73 {approx = true} : vector<16x1xf32> -> vector<16x1xf32>
    %75 = vector.broadcast %74 : vector<16x1xf32> to vector<16x8xf32>
    %76 = arith.mulf %71, %75 : vector<16x8xf32>
    %c0_32 = arith.constant 0 : index
    %c3 = arith.constant 3 : index
    %c0_33 = arith.constant 0 : index
    %c0_34 = arith.constant 0 : index
    %77 = vector.load %arg6[%c0_32, %c3, %c0_33, %c0_34] : memref<1x4x16x8xf32, #tpu.memory_space<vmem>>, vector<1x1x16x8xf32>
    %78 = vector.shape_cast %77 : vector<1x1x16x8xf32> to vector<16x8xf32>
    %79 = vector.shape_cast %76 : vector<16x8xf32> to vector<1x1x16x8xf32>
    tpu.vector_store %arg6[%c0_32, %c3, %c0_33, %c0_34], %79 {strides = array<i32>} : memref<1x4x16x8xf32, #tpu.memory_space<vmem>>, vector<1x1x16x8xf32>,
    %80 = arith.truncf %76 : vector<16x8xf32> to vector<16x8xbf16>
    %81 = vector.extract_strided_slice %6 {offsets = [0, 24], sizes = [8, 8], strides = [1, 1]} : vector<8x32xbf16> to vector<8x8xbf16>
    %cst_35 = arith.constant dense<0.000000e+00> : vector<16x8xf32>
    %82 = tpu.matmul %80, %81, %cst_35 {dimension_numbers = #tpu.dot_dimension_numbers<[1], [0], [0], [1], [0, 0, 1, 1], [], []>} : vector<16x8xbf16>, vector<8x8xbf16>, vector<16x8xf32> -> vector<16x8xf32>
    %83 = tpu.concatenate %25, %44, %63, %82 in 1 : vector<16x8xf32>, vector<16x8xf32>, vector<16x8xf32>, vector<16x8xf32> -> vector<16x32xf32>
    %c0_36 = arith.constant 0 : index
    %c0_37 = arith.constant 0 : index
    %c0_38 = arith.constant 0 : index
    %84 = vector.load %arg5[%c0_36, %c0_37, %c0_38] : memref<1x16x32xf32, #tpu.memory_space<vmem>>, vector<1x16x32xf32>
    %85 = vector.shape_cast %84 : vector<1x16x32xf32> to vector<16x32xf32>
    %86 = vector.shape_cast %83 : vector<16x32xf32> to vector<1x16x32xf32>
    tpu.vector_store %arg5[%c0_36, %c0_37, %c0_38], %86 {strides = array<i32>} : memref<1x16x32xf32, #tpu.memory_space<vmem>>, vector<1x16x32xf32>,
    return
  }
  func.func @transform_0(%arg0: i32, %arg1: i32) -> (i32, i32, i32) {
    %c0_i32 = arith.constant 0 : i32
    %c0_i32_0 = arith.constant 0 : i32
    return %arg0, %arg1, %c0_i32 : i32, i32, i32
  }
  func.func @transform_1(%arg0: i32, %arg1: i32) -> (i32, i32, i32) {
    %c0_i32 = arith.constant 0 : i32
    %c0_i32_0 = arith.constant 0 : i32
    %c0_i32_1 = arith.constant 0 : i32
    return %arg0, %c0_i32, %c0_i32_0 : i32, i32, i32
  }
  func.func @transform_2(%arg0: i32, %arg1: i32) -> (i32, i32, i32) {
    %c0_i32 = arith.constant 0 : i32
    %c0_i32_0 = arith.constant 0 : i32
    %c0_i32_1 = arith.constant 0 : i32
    return %arg0, %c0_i32, %c0_i32_0 : i32, i32, i32
  }
  func.func @transform_3(%arg0: i32, %arg1: i32) -> (i32, i32, i32) {
    %c0_i32 = arith.constant 0 : i32
    %c0_i32_0 = arith.constant 0 : i32
    return %arg0, %arg1, %c0_i32 : i32, i32, i32
  }
  func.func @transform_4(%arg0: i32, %arg1: i32) -> (i32, i32, i32, i32) {
    %c0_i32 = arith.constant 0 : i32
    %c0_i32_0 = arith.constant 0 : i32
    %c0_i32_1 = arith.constant 0 : i32
    return %arg0, %c0_i32, %arg1, %c0_i32_0 : i32, i32, i32, i32
  }
}

</mosaic_0001>

<bundles_post_ra>
// kernel: my_attention_forward.2
= control target key start
LH: loop header
LB: loop body
LE: loop exit
PB: predicated region body
PF: predicated region fallthrough
CT: control target
= control target key end

     0   :  { %s588_s18 = smov 0   ;;  %s590_s19 = smov 0   ;;  %s633_s0 = inlined_call_operand.vmem [shape: f32[2,16,32], index: 0, kind: input, shape index: {}]   ;;  %s634_s1 = inlined_call_operand.vmem [shape: f32[2,16,32], index: 1, kind: input, shape index: {}]   ;;  %s635_s2 = inlined_call_operand.vmem [shape: bf16[8,16], index: 2, kind: input, shape index: {}]   ;;  %s636_s3 = inlined_call_operand.vmem [shape: f32[8,1], index: 3, kind: input, shape index: {}]   ;;  %s637_s4 = inlined_call_operand.vmem [shape: bf16[2,8,32], index: 4, kind: output, shape index: {0}]   ;;  %s638_s5 = inlined_call_operand.vmem [shape: bf16[2,8,32], index: 5, kind: output, shape index: {1}]  }
   0x1   :  { %s592_s20 = smov 0  }
   0x2 LB: > { %s28_s21 = sadd.s32 1, %s551_s19  ;;  %p494_p0 = scmp.ge.s32.totalorder %s555_s20, 1  ;;  %s555_s20 = sphi %s592_s20, %s16_s20   ;;  %s551_s19 = sphi %s590_s19, %s640_s19   ;;  %s547_s18 = sphi %s588_s18, %s639_s18  }
   0x3   : > { %p30_p1 = scmp.ge.s32.totalorder %s28_s21, 2  ;;  %p226_p2 = scmp.lt.s32.totalorder %s555_s20, 3 }
   0x5   : > { %s642_s21 = smov (%p30_p1, %s28_s21), 0  ;;  %p227_p3 = pnand %p494_p0, %p226_p2 }
   0x6   : > { %p274_p4 = scmp.lt.s32.totalorder (!%p227_p3), %s547_s18, 1 }
   0x7   : > { %230 = sbr.rel (%p227_p3) target bundleno = 156 (0x9c), region = 36 }
   0xc   : > { %v306_v0 = vld [vmem:[%s636_s3] sm:$0xff]  ;;  %v557_v1 = vmov 0   ;;  %s644_s18 = smov (!%p274_p4, %s547_s18), 1  ;;  %vm318_vm0 = vcmask 130048   ;;  %vm350_vm1 = vcmask 257024  }
   0xd   : > { %532 = vset.pattern.permute.xlu0 %v557_v1  ;;  %s505_s24 = sshll.u32 %s644_s18, 4  ;;  %v305_v8 = vld [vmem:[%s635_s2] sm:$0xf]  ;;  %s499_s8 = sshll.u32 %s644_s18, 2 }
   0xe   : > { %315 = vperm.xlu0 %532, %v306_v0   ;;  %s281_s27 = scalar_lea.vmem %s633_s0, %s505_s24  ;;  %s289_s30 = scalar_lea.vmem %s634_s1, %s505_s24 }
   0xf   : > { %v307_v2 = vld [vmem:[%s281_s27] sm:$0xff]  ;;  %v308_v3 = vld [vmem:[%s281_s27 + $0x8] sm:$0xff]  ;;  %s303_s11 = scalar_lea.vmem %s638_s5, %s499_s8  ;;  %s296_s14 = scalar_lea.vmem %s637_s4, %s499_s8 }
  0x10   : > { %v309_v4 = vpack.c.bf16 %v308_v3, %v307_v2  ;;  %v310_v5 = vld [vmem:[%s289_s30] sm:$0xff]  ;;  %v311_v6 = vld [vmem:[%s289_s30 + $0x8] sm:$0xff] }
  0x11   : > { %v312_v7 = vpack.c.bf16 %v311_v6, %v310_v5 }
  0x12   : > { %329 = vmatpush.bf16.msra.mxu0 %v309_v4 }
  0x13   : > { %342 = vmatpush.bf16.msra.mxu1 %v312_v7 }
  0x15   : > { %501 = vmatmul.msk.bf16.vlgmr.msra.gmra.mxu0 %vm318_vm0, %v305_v8 }
  0x16   : > { %502 = vmatmul.msk.bf16.vlgmr.msra.gmra.mxu1 %vm318_vm0, %v305_v8 }
  0x80   : > { %v316_v9 = vpop.permute.xlu0 %315 }
  0x92   : > { %v331_v10 = vpop.f32.mrf.mxu0 }
  0x93   : > { %v332_v11 = vadd.f32 %v331_v10, %v316_v9  ;;  %v344_v12 = vpop.f32.mrf.mxu1 }
  0x94   : > { %v345_v13 = vadd.f32 %v344_v12, %v316_v9 }
  0x95   : > { %v348_v14 = vmul.f32 0.35355338, %v332_v11 }
  0x96   : > { %v352_v15 = vpack.c.bf16 %v345_v13, %v345_v13 }
  0x97   : > { %v349_v16 = vpack.c.bf16 %v348_v14, %v348_v14 }
  0x98   : > { %353 = vst.msk [vmem:[%s303_s11] sm:$0xf] %vm350_vm1, %v352_v15 }
  0x99   : > { %351 = vst.msk [vmem:[%s296_s14] sm:$0xf] %vm350_vm1, %v349_v16 }
  0x9a   : > { %v333_v17 = vpop.f32.mrf.mxu0 }
  0x9b   : > { %v346_v18 = vpop.f32.mrf.mxu1 }
  0x9c PF: > { %s16_s20 = sadd.s32 1, %s555_s20   ;;  %s639_s18 = smov %s551_s19 }
  0x9d   : > { %p13_p5 = scmp.ge.s32.totalorder %s16_s20, 4   ;;  %s640_s19 = smov %s642_s21 }
  0x9f   :  { %15 = sbr.rel (!%p13_p5) target bundleno = 2 (0x2), region = 81 }

// kernel: my_attention_forward.3
= control target key start
LH: loop header
LB: loop body
LE: loop exit
PB: predicated region body
PF: predicated region fallthrough
CT: control target
= control target key end

     0   :  { %s941_s15 = smov 0   ;;  %s943_s16 = smov 0   ;;  %s1068_s0 = inlined_call_operand.vmem [shape: f32[2,16,32], index: 0, kind: input, shape index: {}]   ;;  %s1069_s1 = inlined_call_operand.vmem [shape: bf16[2,8,32], index: 1, kind: input, shape index: {}]   ;;  %s1070_s2 = inlined_call_operand.vmem [shape: bf16[2,8,32], index: 2, kind: input, shape index: {}]   ;;  %s1071_s3 = inlined_call_operand.vmem [shape: f32[2,16,32], index: 3, kind: output, shape index: {0}]   ;;  %s1072_s4 = inlined_call_operand.vmem [shape: f32[2,4,16,8], index: 4, kind: output, shape index: {1}]  }
   0x1   :  { %s945_s17 = smov 0  }
   0x2 LB: > { %s27_s18 = sadd.s32 1, %s904_s16  ;;  %p796_p0 = scmp.ge.s32.totalorder %s908_s17, 1  ;;  %s908_s17 = sphi %s945_s17, %s15_s17   ;;  %s904_s16 = sphi %s943_s16, %s1074_s16   ;;  %s900_s15 = sphi %s941_s15, %s1073_s15  }
   0x3   : > { %p29_p1 = scmp.ge.s32.totalorder %s27_s18, 2  ;;  %p206_p2 = scmp.lt.s32.totalorder %s908_s17, 3 }
   0x5   : > { %s1076_s18 = smov (%p29_p1, %s27_s18), 0  ;;  %p207_p3 = pnand %p796_p0, %p206_p2 }
   0x6   : > { %p258_p4 = scmp.lt.s32.totalorder (!%p207_p3), %s900_s15, 1  ;;  %s910_s27 = smov (!%p207_p3), 120  }
   0x7   : > { %210 = sbr.rel (%p207_p3) target bundleno = 1087 (0x43f), region = 32  ;;  %s911_s28 = smov (!%p207_p3), 104  }
   0x8   : > { %s912_s29 = smov (!%p207_p3), 112   ;;  %s913_s11 = smov (!%p207_p3), 8  }
   0x9   : > { %s914_s12 = smov (!%p207_p3), 16   ;;  %s915_s13 = smov (!%p207_p3), 24  }
   0xc   : > { %s1078_s15 = smov (!%p258_p4, %s900_s15), 1  ;;  %vm307_vm0 = vcmask 64512   ;;  %vm356_vm1 = vcmask 1043456   ;;  %vm622_vm2 = vcmask 130048   ;;  %vm625_vm3 = vcmask 195584  }
   0xd   : > { %s821_s19 = sshll.u32 %s1078_s15, 4  ;;  %s799_s20 = sshll.u32 %s1078_s15, 2  ;;  %vm628_vm4 = vcmask 261120  }
   0xe   : > { %s270_s23 = scalar_lea.vmem %s1069_s1, %s799_s20  ;;  %s265_s26 = scalar_lea.vmem %s1068_s0, %s821_s19 }
   0xf   : > { %v300_v0 = vld [vmem:[%s270_s23] sm:$0xf]  ;;  %v297_v4 = vld [vmem:[%s265_s26 + $0x8] sm:$0xff]  ;;  %s274_s6 = scalar_lea.vmem %s1070_s2, %s799_s20  ;;  %s823_s7 = sshll.u32 %s1078_s15, 6 }
  0x10   : > { %v312_v1 = vsel %vm307_vm0, %v300_v0, 0  ;;  %v377_v2 = vunpack.c.l.b16 %v300_v0  ;;  %v296_v3 = vld [vmem:[%s265_s26] sm:$0xff]  ;;  %v299_v6 = vpack.c.bf16 %v297_v4, %v297_v4  ;;  %s1005_s10 = scalar_lea.vmem %s1072_s4, %s823_s7  ;;  %s283_s21 = scalar_lea.vmem %s1071_s3, %s821_s19 }
  0x11   : > { %321 = vmatpush.bf16.xpose.msra.mxu0 %v312_v1  ;;  %v298_v5 = vpack.c.bf16 %v296_v3, %v296_v3  ;;  %v301_v34 = vld [vmem:[%s274_s6] sm:$0xf] }
  0x12   : > { %v378_v7 = vpack.c.b16 %v377_v2, %v377_v2  ;;  %v305_v9 = vunpack.c.l.b16 %v299_v6  ;;  %v358_v35 = vsel %vm356_vm1, %v301_v34, 0  ;;  %v428_v36 = vunpack.c.l.b16 %v301_v34 }
  0x13   : > { %v304_v8 = vunpack.c.l.b16 %v298_v5  ;;  %367 = vmatpush.bf16.msra.mxu1 %v358_v35 }
  0x14   : > { %379 = vrot.lane.b32.xlu1 %v378_v7, %s910_s27  ;;  %v996_v37 = vpack.c.b16 %v428_v36, %v428_v36 }
  0x15   : > { %v306_v10 = vpack.c.b16 %v305_v9, %v304_v8 }
  0x17   : > { %374 = vrot.lane.b32.xlu2 %v306_v10, %s910_s27 }
  0x18   : > { %805 = vmatmul.msk.bf16.vlgmr.msra.gmra.mxu0 %vm307_vm0, %v306_v10 }
  0x1f   : > { %526 = vrot.lane.b32.xlu2 %v378_v7, %s911_s28 }
  0x71   : > { %v375_v13 = vpop.permute.xlu2 %374 }
  0x79   : > { %v527_v26 = vpop.permute.xlu2 %526 }
  0x7a   : > { %v532_v28 = vsel %vm307_vm0, %v527_v26, 0 }
  0x7b   : > { %541 = vmatpush.bf16.xpose.msrb.mxu0 %v532_v28 }
  0x86   : > { %v380_v11 = vpop.permute.xlu1 %379 }
  0x87   : > { %v385_v12 = vsel %vm307_vm0, %v380_v11, 0 }
  0x88   : > { %394 = vmatpush.bf16.xpose.msra.mxu2 %v385_v12 }
  0x8f   : > { %807 = vmatmul.msk.bf16.vlgmr.msra.gmra.mxu2 %vm307_vm0, %v375_v13 }
  0x95   : > { %v323_v14 = vpop.f32.mrf.mxu0 }
  0x96   : > { %v328_v15 = vsel %vm307_vm0, %v323_v14, -inf }
  0x97   : > { %329 = vmax.xlane.f32.xlu0 %v328_v15 }
  0x9d   : > { %v325_v16 = vpop.f32.mrf.mxu0 }
  0x9e   : > { %v331_v17 = vsel %vm307_vm0, %v325_v16, -inf }
  0x9f   : > { %332 = vmax.xlane.f32.xlu0 %v331_v17 }
  0xb3   : > { %454 = vrot.lane.b32.xlu0 %v378_v7, %s912_s29 }
  0xbb   : > { %452 = vrot.lane.b32.xlu0 %v306_v10, %s912_s29 }
 0x10a   : > { %v330_v18 = vpop.xlane.xlu0 %329 }
 0x10b   : > { %v334_v19 = vsub.f32 %v323_v14, %v330_v18 }
 0x10d   : > { %v336_v20 = vmul.f32 1.442695, %v334_v19 }
 0x10f   : > { %854 = vpow2.f32 %v336_v20 }
 0x112   : > { %v333_v21 = vpop.xlane.xlu0 %332  ;;  %v396_v27 = vpop.f32.mrf.mxu2 }
 0x113   : > { %v335_v22 = vsub.f32 %v325_v16, %v333_v21  ;;  %v401_v29 = vsel %vm307_vm0, %v396_v27, -inf }
 0x114   : > { %402 = vmax.xlane.f32.xlu0 %v401_v29 }
 0x115   : > { %v855_v23 = vpop.eup %854  ;;  %v338_v24 = vmul.f32 1.442695, %v335_v22 }
 0x116   : > { %v340_v25 = vsel %vm307_vm0, %v855_v23, 0.0 }
 0x117   : > { %856 = vpow2.f32 %v338_v24  ;;  %341 = vadd.xlane.f32.xlu1 %v340_v25 }
 0x11a   : > { %v398_v32 = vpop.f32.mrf.mxu2 }
 0x11b   : > { %v404_v33 = vsel %vm307_vm0, %v398_v32, -inf }
 0x11d   : > { %v857_v30 = vpop.eup %856 }
 0x11e   : > { %v343_v31 = vsel %vm307_vm0, %v857_v30, 0.0 }
 0x11f   : > { %344 = vadd.xlane.f32.xlu2 %v343_v31 }
 0x125   : > { %v455_v38 = vpop.permute.xlu0 %454 }
 0x126   : > { %v460_v39 = vsel %vm307_vm0, %v455_v38, 0 }
 0x127   : > { %469 = vmatpush.bf16.xpose.msrb.mxu1 %v460_v39 }
 0x12d   : > { %v453_v48 = vpop.permute.xlu0 %452 }
 0x137   : > { %524 = vrot.lane.b32.xlu2 %v306_v10, %s911_s28 }
 0x160   : > { %405 = vmax.xlane.f32.xlu2 %v404_v33 }
 0x178   : > { %430 = vrot.lane.b32.xlu2 %v996_v37, %s910_s27 }
 0x187   : > { %v403_v60 = vpop.xlane.xlu0 %402 }
 0x188   : > { %v407_v61 = vsub.f32 %v396_v27, %v403_v60 }
 0x18a   : > { %v342_v40 = vpop.xlane.xlu1 %341  ;;  %v409_v0 = vmul.f32 1.442695, %v407_v61 }
 0x18b   : > { %858 = vrcp.f32 %v342_v40 }
 0x191   : > { %v859_v41 = vpop.eup %858 }
 0x192   : > { %v345_v42 = vpop.xlane.xlu2 %344  ;;  %v348_v43 = vmul.f32 %v859_v41, %v855_v23 }
 0x193   : > { %860 = vrcp.f32 %v345_v42 }
 0x194   : > { %350 = vst.msk [vmem:[%s1005_s10] sm:$0xff] %vm307_vm0, %v348_v43 }
 0x199   : > { %v861_v44 = vpop.eup %860 }
 0x19a   : > { %v525_v45 = vpop.permute.xlu2 %524  ;;  %v349_v46 = vmul.f32 %v861_v44, %v857_v30 }
 0x19b   : > { %815 = vmatmul.msk.bf16.vlgmr.msrb.gmra.mxu0 %vm307_vm0, %v525_v45 }
 0x19c   : > { %351 = vst.msk [vmem:[%s1005_s10 + $0x8] sm:$0xff] %vm307_vm0, %v349_v46  ;;  %v352_v47 = vpack.c.bf16 %v349_v46, %v348_v43 }
 0x19e   : > { %806 = vmatmul.msk.bf16.vlgmr.msra.gmra.mxu1 %vm307_vm0, %v352_v47 }
 0x1ae   : > { %811 = vmatmul.msk.bf16.vlgmr.msrb.gmra.mxu1 %vm307_vm0, %v453_v48 }
 0x1d3   : > { %v406_v49 = vpop.xlane.xlu2 %405 }
 0x1d4   : > { %v408_v50 = vsub.f32 %v398_v32, %v406_v49 }
 0x1d6   : > { %v411_v51 = vmul.f32 1.442695, %v408_v50 }
 0x1d8   : > { %862 = vpow2.f32 %v411_v51 }
 0x1d9   : > { %864 = vpow2.f32 %v409_v0 }
 0x1db   : > { %v431_v12 = vpop.permute.xlu2 %430 }
 0x1dc   : > { %v436_v14 = vsel %vm356_vm1, %v431_v12, 0 }
 0x1dd   : > { %445 = vmatpush.bf16.msra.mxu3 %v436_v14 }
 0x1de   : > { %v863_v52 = vpop.eup %862 }
 0x1df   : > { %v416_v53 = vsel %vm307_vm0, %v863_v52, 0.0  ;;  %v865_v3 = vpop.eup %864 }
 0x1e0   : > { %417 = vadd.xlane.f32.xlu0 %v416_v53  ;;  %v413_v4 = vsel %vm307_vm0, %v865_v3, 0.0 }
 0x218   : > { %v543_v54 = vpop.f32.mrf.mxu0 }
 0x219   : > { %v548_v55 = vsel %vm307_vm0, %v543_v54, -inf }
 0x21a   : > { %549 = vmax.xlane.f32.xlu1 %v548_v55 }
 0x21b   : > { %v1016_v56 = vpop.f32.mrf.mxu1 }
 0x220   : > { %v545_v57 = vpop.f32.mrf.mxu0 }
 0x221   : > { %v551_v58 = vsel %vm307_vm0, %v545_v57, -inf }
 0x222   : > { %552 = vmax.xlane.f32.xlu1 %v551_v58 }
 0x223   : > { %v1019_v59 = vpop.f32.mrf.mxu1 }
 0x22b   : > { %v471_v62 = vpop.f32.mrf.mxu1 }
 0x22c   : > { %v476_v63 = vsel %vm307_vm0, %v471_v62, -inf }
 0x22d   : > { %477 = vmax.xlane.f32.xlu1 %v476_v63 }
 0x233   : > { %v473_v1 = vpop.f32.mrf.mxu1 }
 0x234   : > { %v479_v2 = vsel %vm307_vm0, %v473_v1, -inf }
 0x235   : > { %480 = vmax.xlane.f32.xlu1 %v479_v2 }
 0x23d   : > { %414 = vadd.xlane.f32.xlu1 %v413_v4 }
 0x253   : > { %v418_v5 = vpop.xlane.xlu0 %417 }
 0x254   : > { %866 = vrcp.f32 %v418_v5 }
 0x25a   : > { %v867_v6 = vpop.eup %866 }
 0x25b   : > { %v422_v7 = vmul.f32 %v867_v6, %v863_v52 }
 0x25d   : > { %809 = vst.msk [vmem:[%s1005_s10 + $0x18] sm:$0xff] %vm307_vm0, %v422_v7 }
 0x28d   : > { %v550_v8 = vpop.xlane.xlu1 %549 }
 0x28e   : > { %v554_v9 = vsub.f32 %v543_v54, %v550_v8 }
 0x290   : > { %v556_v10 = vmul.f32 1.442695, %v554_v9 }
 0x292   : > { %868 = vpow2.f32 %v556_v10 }
 0x295   : > { %v553_v11 = vpop.xlane.xlu1 %552 }
 0x296   : > { %v555_v13 = vsub.f32 %v545_v57, %v553_v11 }
 0x298   : > { %v869_v15 = vpop.eup %868  ;;  %v558_v16 = vmul.f32 1.442695, %v555_v13 }
 0x299   : > { %v560_v17 = vsel %vm307_vm0, %v869_v15, 0.0 }
 0x29a   : > { %870 = vpow2.f32 %v558_v16  ;;  %561 = vadd.xlane.f32.xlu1 %v560_v17 }
 0x2a0   : > { %v871_v18 = vpop.eup %870  ;;  %v478_v19 = vpop.xlane.xlu1 %477 }
 0x2a1   : > { %v482_v20 = vsub.f32 %v471_v62, %v478_v19  ;;  %v563_v21 = vsel %vm307_vm0, %v871_v18, 0.0 }
 0x2a2   : > { %564 = vadd.xlane.f32.xlu0 %v563_v21 }
 0x2a3   : > { %v484_v22 = vmul.f32 1.442695, %v482_v20 }
 0x2a5   : > { %872 = vpow2.f32 %v484_v22 }
 0x2a8   : > { %v481_v23 = vpop.xlane.xlu1 %480 }
 0x2a9   : > { %v483_v24 = vsub.f32 %v473_v1, %v481_v23 }
 0x2ab   : > { %v873_v25 = vpop.eup %872  ;;  %v486_v26 = vmul.f32 1.442695, %v483_v24 }
 0x2ac   : > { %v488_v27 = vsel %vm307_vm0, %v873_v25, 0.0 }
 0x2ad   : > { %874 = vpow2.f32 %v486_v26  ;;  %489 = vadd.xlane.f32.xlu1 %v488_v27 }
 0x2b0   : > { %v415_v28 = vpop.xlane.xlu1 %414 }
 0x2b1   : > { %876 = vrcp.f32 %v415_v28 }
 0x2b3   : > { %v875_v29 = vpop.eup %874 }
 0x2b4   : > { %v491_v30 = vsel %vm307_vm0, %v875_v29, 0.0 }
 0x2b5   : > { %492 = vadd.xlane.f32.xlu0 %v491_v30 }
 0x2b7   : > { %v877_v31 = vpop.eup %876 }
 0x2b8   : > { %v421_v32 = vmul.f32 %v877_v31, %v865_v3 }
 0x2ba   : > { %808 = vst.msk [vmem:[%s1005_s10 + $0x10] sm:$0xff] %vm307_vm0, %v421_v32  ;;  %v426_v33 = vpack.c.bf16 %v422_v7, %v421_v32 }
 0x2bc   : > { %810 = vmatmul.msk.bf16.vlgmr.msra.gmra.mxu3 %vm307_vm0, %v426_v33 }
 0x2c6   : > { %502 = vrot.lane.b32.xlu1 %v996_v37, %s912_s29 }
 0x2c9   : > { %574 = vrot.lane.b32.xlu0 %v996_v37, %s911_s28 }
 0x30d   : > { %v562_v34 = vpop.xlane.xlu1 %561 }
 0x30e   : > { %878 = vrcp.f32 %v562_v34 }
 0x314   : > { %v879_v35 = vpop.eup %878 }
 0x315   : > { %v568_v36 = vmul.f32 %v879_v35, %v869_v15  ;;  %v565_v38 = vpop.xlane.xlu0 %564 }
 0x316   : > { %880 = vrcp.f32 %v565_v38 }
 0x317   : > { %816 = vst.msk [vmem:[%s1005_s10 + $0x30] sm:$0xff] %vm307_vm0, %v568_v36 }
 0x31c   : > { %v881_v39 = vpop.eup %880 }
 0x31d   : > { %v569_v40 = vmul.f32 %v881_v39, %v871_v18 }
 0x31f   : > { %817 = vst.msk [vmem:[%s1005_s10 + $0x38] sm:$0xff] %vm307_vm0, %v569_v40  ;;  %v573_v51 = vpack.c.bf16 %v569_v40, %v568_v36 }
 0x320   : > { %v490_v41 = vpop.xlane.xlu1 %489 }
 0x321   : > { %882 = vrcp.f32 %v490_v41 }
 0x327   : > { %v883_v42 = vpop.eup %882 }
 0x328   : > { %v496_v43 = vmul.f32 %v883_v42, %v873_v25  ;;  %v493_v44 = vpop.xlane.xlu0 %492 }
 0x329   : > { %884 = vrcp.f32 %v493_v44 }
 0x32a   : > { %812 = vst.msk [vmem:[%s1005_s10 + $0x20] sm:$0xff] %vm307_vm0, %v496_v43 }
 0x32f   : > { %v885_v37 = vpop.eup %884 }
 0x330   : > { %v497_v45 = vmul.f32 %v885_v37, %v875_v29 }
 0x332   : > { %813 = vst.msk [vmem:[%s1005_s10 + $0x28] sm:$0xff] %vm307_vm0, %v497_v45  ;;  %v501_v49 = vpack.c.bf16 %v497_v45, %v496_v43 }
 0x338   : > { %v503_v46 = vpop.permute.xlu1 %502 }
 0x339   : > { %v508_v47 = vsel %vm356_vm1, %v503_v46, 0 }
 0x33a   : > { %517 = vmatpush.bf16.msrb.mxu3 %v508_v47 }
 0x33b   : > { %v575_v48 = vpop.permute.xlu0 %574 }
 0x33c   : > { %v580_v50 = vsel %vm356_vm1, %v575_v48, 0 }
 0x33d   : > { %814 = vmatmul.msk.bf16.vlgmr.msrb.gmra.mxu3 %vm307_vm0, %v501_v49  ;;  %589 = vmatpush.bf16.msrb.mxu2 %v580_v50 }
 0x33f   : > { %v447_v52 = vpop.f32.mrf.mxu3 }
 0x340   : > { %598 = vrot.lane.b32.xlu2 %v447_v52, %s913_s11  ;;  %818 = vmatmul.msk.bf16.vlgmr.msrb.gmra.mxu2 %vm307_vm0, %v573_v51 }
 0x347   : > { %v449_v53 = vpop.f32.mrf.mxu3 }
 0x348   : > { %600 = vrot.lane.b32.xlu2 %v449_v53, %s913_s11 }
 0x39a   : > { %v599_v60 = vpop.permute.xlu2 %598 }
 0x39b   : > { %v620_v63 = vsel %vm307_vm0, %v1016_v56, %v599_v60 }
 0x3a2   : > { %v601_v61 = vpop.permute.xlu2 %600 }
 0x3a3   : > { %v621_v3 = vsel %vm307_vm0, %v1019_v59, %v601_v61 }
 0x3c0   : > { %v519_v54 = vpop.f32.mrf.mxu3 }
 0x3c1   : > { %606 = vrot.lane.b32.xlu2 %v519_v54, %s914_s12 }
 0x3c3   : > { %v591_v55 = vpop.f32.mrf.mxu2 }
 0x3c4   : > { %614 = vrot.lane.b32.xlu1 %v591_v55, %s915_s13 }
 0x3c8   : > { %v521_v57 = vpop.f32.mrf.mxu3 }
 0x3c9   : > { %608 = vrot.lane.b32.xlu0 %v521_v57, %s914_s12 }
 0x3cb   : > { %v593_v58 = vpop.f32.mrf.mxu2 }
 0x3cc   : > { %616 = vrot.lane.b32.xlu2 %v593_v58, %s915_s13 }
 0x41b   : > { %v607_v62 = vpop.permute.xlu2 %606 }
 0x41c   : > { %v623_v0 = vsel %vm622_vm2, %v620_v63, %v607_v62 }
 0x426   : > { %v617_v5 = vpop.permute.xlu2 %616 }
 0x436   : > { %v615_v1 = vpop.permute.xlu1 %614 }
 0x437   : > { %v626_v2 = vsel %vm625_vm3, %v623_v0, %v615_v1 }
 0x438   : > { %629 = vst.msk [vmem:[%s283_s21] sm:$0xff] %vm628_vm4, %v626_v2 }
 0x43b   : > { %v609_v4 = vpop.permute.xlu0 %608 }
 0x43c   : > { %v624_v6 = vsel %vm622_vm2, %v621_v3, %v609_v4 }
 0x43d   : > { %v627_v7 = vsel %vm625_vm3, %v624_v6, %v617_v5 }
 0x43e   : > { %630 = vst.msk [vmem:[%s283_s21 + $0x8] sm:$0xff] %vm628_vm4, %v627_v7 }
 0x43f PF: > { %s15_s17 = sadd.s32 1, %s908_s17   ;;  %s1073_s15 = smov %s904_s16 }
 0x440   : > { %p12_p5 = scmp.ge.s32.totalorder %s15_s17, 4   ;;  %s1074_s16 = smov %s1076_s18 }
 0x442   :  { %14 = sbr.rel (!%p12_p5) target bundleno = 2 (0x2), region = 83 }

</bundles_post_ra>
